<compile_context>
chip_gen: v7x
topology: tpu7x:2x2x1
jax: 0.10.0
libtpu: 0.0.40
codegen_flags: <defaults>
</compile_context>

<pallas_src>
import jax
import jax.numpy as jnp
from jax import lax
from jax.experimental import pallas as pl
from jax.experimental.pallas import tpu as pltpu

H1 = 64
H2 = 32
OUT = 1


def _round_up(a, m):
    return ((a + m - 1) // m) * m


def _phishing_mlp_kernel(x_ref, w1_ref, b1_ref, w2_ref, b2_ref,
                         w3_ref, b3_ref, o_ref):
    # x tile: (batch_tile, F) bf16.  Weights: PyTorch (out, in) layout, bf16.
    x = x_ref[...]

    # Layer 1: h1^T = W1 @ x^T  -> (H1, bt), lane-dense.  Contracts F of both
    # operands; the implicit x relayout goes to the XLU slot (cheap).
    h1t = lax.dot_general(
        w1_ref[...], x,
        dimension_numbers=(((1,), (1,)), ((), ())),
        preferred_element_type=jnp.float32)
    h1t = jnp.maximum(h1t + b1_ref[...], 0.0)            # f32 bias/ReLU

    # Dropout(0.2): inference-mode identity.
    # TODO(synk): training-mode dropout (pltpu.prng_seed + prng_random_bits
    #             mask) not emitted; eval semantics are reproduced exactly.

    # Layer 2: bf16 x bf16 MXU, f32 accumulation -> (H2, bt), lane-dense.
    h2t = jnp.dot(w2_ref[...], h1t.astype(jnp.bfloat16),
                  preferred_element_type=jnp.float32)
    h2t = jnp.maximum(h2t + b2_ref[...], 0.0)             # f32 bias/ReLU

    # Layer 3 + Sigmoid: (1, bt) lane-dense slab, unmasked vst.
    zt = jnp.dot(w3_ref[...], h2t.astype(jnp.bfloat16),
                 preferred_element_type=jnp.float32)
    o_ref[...] = jax.nn.sigmoid(zt + b3_ref[...]).astype(o_ref.dtype)


def phishing_nn_forward(x, params, *, batch_tile=None):
    """x: (B, F) float32. params: PyTorch-layout dict (w: (out,in), b: (out,1)).

    Returns (B, 1) float32 = sigmoid(W3 @ relu(W2 @ relu(W1 @ x^T + b1) + b2) + b3)^T.
    """
    B, F = x.shape
    b_pad128 = _round_up(B, 128)

    if batch_tile is None:
        # Big tiles amortize grid-step overhead; clamp to the padded batch so
        # padding waste stays small; prefer >= 2 tiles (v7x has 2 TCs/chip).
        batch_tile = min(2048, max(128, _round_up(pl.cdiv(b_pad128, 2), 128)))
    else:
        batch_tile = max(128, min(_round_up(batch_tile, 128), b_pad128))

    num_tiles = pl.cdiv(B, batch_tile)
    B_pad = num_tiles * batch_tile

    # Pad the batch (padded rows produce garbage that is sliced off below).
    x_p = x if B_pad == B else jnp.pad(x, ((0, B_pad - B), (0, 0)))

    # Stream x / weights as bf16 (halves HBM bytes of the dominant x stream);
    # biases stay f32 and are added to f32 accumulators.
    x_bf = x_p.astype(jnp.bfloat16)
    w1 = params["w1"].astype(jnp.bfloat16)          # (H1, F)
    w2 = params["w2"].astype(jnp.bfloat16)          # (H2, H1)
    w3 = params["w3"].astype(jnp.bfloat16)          # (OUT, H2)
    b1 = params["b1"].astype(jnp.float32)           # (H1, 1)
    b2 = params["b2"].astype(jnp.float32)           # (H2, 1)
    b3 = params["b3"].astype(jnp.float32)           # (OUT, 1)

    weight_bytes = 2 * (F * H1 + H1 * H2 + H2 * OUT) + 4 * (H1 + H2 + OUT)
    cost = pl.CostEstimate(
        flops=2 * B_pad * (F * H1 + H1 * H2 + H2 * OUT),
        transcendentals=B_pad,                                    # sigmoid
        bytes_accessed=B_pad * F * 2 + B_pad * OUT * 4 + weight_bytes,
    )

    out_t = pl.pallas_call(
        _phishing_mlp_kernel,
        out_shape=jax.ShapeDtypeStruct((OUT, B_pad), jnp.float32),
        grid_spec=pltpu.PrefetchScalarGridSpec(
            num_scalar_prefetch=0,
            grid=(num_tiles,),
            in_specs=[
                pl.BlockSpec((batch_tile, F), lambda i: (i, 0)),   # x tile
                pl.BlockSpec((H1, F), lambda i: (0, 0)),           # W1 (resident)
                pl.BlockSpec((H1, 1), lambda i: (0, 0)),           # b1
                pl.BlockSpec((H2, H1), lambda i: (0, 0)),          # W2
                pl.BlockSpec((H2, 1), lambda i: (0, 0)),           # b2
                pl.BlockSpec((OUT, H2), lambda i: (0, 0)),         # W3
                pl.BlockSpec((OUT, 1), lambda i: (0, 0)),          # b3
            ],
            # Lane-dense output: last dim is the batch tile (multiple of 128).
            out_specs=pl.BlockSpec((OUT, batch_tile), lambda i: (0, i)),
        ),
        compiler_params=pltpu.CompilerParams(
            dimension_semantics=("parallel",),
        ),
        cost_estimate=cost,
    )(x_bf, w1, b1, w2, b2, w3, b3)

    # (1, B_pad) -> (B_pad, 1) is a layout-identity reshape (no transpose op);
    # slice off the padded rows.
    return out_t.reshape(B_pad, OUT)[:B]


def init_params(key, input_size):
    """Deterministic synthetic parameters, PyTorch nn.Linear layout (out, in)."""
    k1, k2, k3, k4, k5, k6 = jax.random.split(key, 6)

    def _uniform(k, shape, fan_in):
        bound = 1.0 / jnp.sqrt(fan_in)
        return jax.random.uniform(k, shape, jnp.float32, -bound, bound)

    return {
        "w1": _uniform(k1, (H1, input_size), input_size),
        "b1": _uniform(k2, (H1, 1), input_size),
        "w2": _uniform(k3, (H2, H1), H1),
        "b2": _uniform(k4, (H2, 1), H1),
        "w3": _uniform(k5, (OUT, H2), H2),
        "b3": _uniform(k6, (OUT, 1), H2),
    }


def reference_forward(x, params):
    """Pure-JAX reference with the same bf16 quantization as the kernel
    (bf16 MXU operands, f32 accumulation and f32 elementwise)."""
    f32 = jnp.float32
    xb = x.astype(jnp.bfloat16).astype(f32)
    w1 = params["w1"].astype(jnp.bfloat16).astype(f32)
    w2 = params["w2"].astype(jnp.bfloat16).astype(f32)
    w3 = params["w3"].astype(jnp.bfloat16).astype(f32)
    h1 = jnp.maximum(xb @ w1.T + params["b1"].reshape(1, -1), 0.0)
    h1 = h1.astype(jnp.bfloat16).astype(f32)
    h2 = jnp.maximum(h1 @ w2.T + params["b2"].reshape(1, -1), 0.0)
    h2 = h2.astype(jnp.bfloat16).astype(f32)
    return jax.nn.sigmoid(h2 @ w3.T + params["b3"].reshape(1, -1))


if __name__ == "__main__":
    key = jax.random.PRNGKey(0)
    kx, kp = jax.random.split(key)

    # Small demo: 200 samples x 16 phishing features.  B=200 is deliberately
    # NOT a multiple of 128, exercising the padding path; the auto tile picker
    # chooses batch_tile=128 -> a 2-step parallel grid (feeds both v7x TCs).
    B, F = 200, 16
    x = jax.random.normal(kx, (B, F), jnp.float32)
    params = init_params(kp, F)

    out = phishing_nn_forward(x, params)
    out = jax.block_until_ready(out)

    ref = reference_forward(x, params)
    assert out.shape == (B, 1)
    assert jnp.allclose(out, ref, atol=2e-3, rtol=2e-3), "mismatch vs reference"

    print("KERNEL_OK")
</pallas_src>

<mosaic_0001>
module attributes {stable_mosaic.version = 11 : i64} {
  func.func @_phishing_mlp_kernel(%arg0: i32, %arg1: memref<128x16xbf16, #tpu.memory_space<vmem>>, %arg2: memref<64x16xbf16, #tpu.memory_space<vmem>>, %arg3: memref<64x1xf32, #tpu.memory_space<vmem>>, %arg4: memref<32x64xbf16, #tpu.memory_space<vmem>>, %arg5: memref<32x1xf32, #tpu.memory_space<vmem>>, %arg6: memref<1x32xbf16, #tpu.memory_space<vmem>>, %arg7: memref<1x1xf32, #tpu.memory_space<vmem>>, %arg8: memref<1x128xf32, #tpu.memory_space<vmem>>) attributes {dimension_semantics = [#tpu.dimension_semantics<parallel>], iteration_bounds = array<i64: 2>, scalar_prefetch = 0 : i64, scratch_operands = 0 : i64, tpu.core_type = #tpu.core_type<tc>, window_params = [{transform_indices = @transform_0, window_bounds = array<i64: 128, 16>}, {pipeline_mode = #tpu.pipeline_mode<synchronous>, transform_indices = @transform_1, window_bounds = array<i64: 64, 16>}, {pipeline_mode = #tpu.pipeline_mode<synchronous>, transform_indices = @transform_2, window_bounds = array<i64: 64, 1>}, {pipeline_mode = #tpu.pipeline_mode<synchronous>, transform_indices = @transform_3, window_bounds = array<i64: 32, 64>}, {pipeline_mode = #tpu.pipeline_mode<synchronous>, transform_indices = @transform_4, window_bounds = array<i64: 32, 1>}, {pipeline_mode = #tpu.pipeline_mode<synchronous>, transform_indices = @transform_5, window_bounds = array<i64: 1, 32>}, {pipeline_mode = #tpu.pipeline_mode<synchronous>, transform_indices = @transform_6, window_bounds = array<i64: 1, 1>}, {transform_indices = @transform_7, window_bounds = array<i64: 1, 128>}]} {
    %c0 = arith.constant 0 : index
    %c0_0 = arith.constant 0 : index
    %0 = vector.load %arg1[%c0, %c0_0] : memref<128x16xbf16, #tpu.memory_space<vmem>>, vector<128x16xbf16>
    %c0_1 = arith.constant 0 : index
    %c0_2 = arith.constant 0 : index
    %1 = vector.load %arg2[%c0_1, %c0_2] : memref<64x16xbf16, #tpu.memory_space<vmem>>, vector<64x16xbf16>
    %cst = arith.constant dense<0.000000e+00> : vector<64x128xf32>
    %2 = tpu.matmul %1, %0, %cst {dimension_numbers = #tpu.dot_dimension_numbers<[1], [1], [0], [0], [0, 0, 1, 0], [], []>} : vector<64x16xbf16>, vector<128x16xbf16>, vector<64x128xf32> -> vector<64x128xf32>
    %c0_3 = arith.constant 0 : index
    %c0_4 = arith.constant 0 : index
    %3 = vector.load %arg3[%c0_3, %c0_4] : memref<64x1xf32, #tpu.memory_space<vmem>>, vector<64x1xf32>
    %4 = vector.broadcast %3 : vector<64x1xf32> to vector<64x128xf32>
    %5 = arith.addf %2, %4 : vector<64x128xf32>
    %cst_5 = arith.constant 0.000000e+00 : f32
    %6 = vector.broadcast %cst_5 : f32 to vector<64x128xf32>
    %7 = arith.maximumf %5, %6 : vector<64x128xf32>
    %c0_6 = arith.constant 0 : index
    %c0_7 = arith.constant 0 : index
    %8 = vector.load %arg4[%c0_6, %c0_7] : memref<32x64xbf16, #tpu.memory_space<vmem>>, vector<32x64xbf16>
    %9 = arith.truncf %7 : vector<64x128xf32> to vector<64x128xbf16>
    %cst_8 = arith.constant dense<0.000000e+00> : vector<32x128xf32>
    %10 = tpu.matmul %8, %9, %cst_8 {dimension_numbers = #tpu.dot_dimension_numbers<[1], [0], [0], [1], [0, 0, 1, 1], [], []>} : vector<32x64xbf16>, vector<64x128xbf16>, vector<32x128xf32> -> vector<32x128xf32>
    %c0_9 = arith.constant 0 : index
    %c0_10 = arith.constant 0 : index
    %11 = vector.load %arg5[%c0_9, %c0_10] : memref<32x1xf32, #tpu.memory_space<vmem>>, vector<32x1xf32>
    %12 = vector.broadcast %11 : vector<32x1xf32> to vector<32x128xf32>
    %13 = arith.addf %10, %12 : vector<32x128xf32>
    %cst_11 = arith.constant 0.000000e+00 : f32
    %14 = vector.broadcast %cst_11 : f32 to vector<32x128xf32>
    %15 = arith.maximumf %13, %14 : vector<32x128xf32>
    %c0_12 = arith.constant 0 : index
    %c0_13 = arith.constant 0 : index
    %16 = vector.load %arg6[%c0_12, %c0_13] : memref<1x32xbf16, #tpu.memory_space<vmem>>, vector<1x32xbf16>
    %17 = arith.truncf %15 : vector<32x128xf32> to vector<32x128xbf16>
    %cst_14 = arith.constant dense<0.000000e+00> : vector<1x128xf32>
    %18 = tpu.matmul %16, %17, %cst_14 {dimension_numbers = #tpu.dot_dimension_numbers<[1], [0], [0], [1], [0, 0, 1, 1], [], []>} : vector<1x32xbf16>, vector<32x128xbf16>, vector<1x128xf32> -> vector<1x128xf32>
    %c0_15 = arith.constant 0 : index
    %c0_16 = arith.constant 0 : index
    %19 = vector.load %arg7[%c0_15, %c0_16] : memref<1x1xf32, #tpu.memory_space<vmem>>, vector<1x1xf32>
    %20 = vector.broadcast %19 : vector<1x1xf32> to vector<1x128xf32>
    %21 = arith.addf %18, %20 : vector<1x128xf32>
    %22 = arith.negf %21 : vector<1x128xf32>
    %23 = math.exp %22 : vector<1x128xf32>
    %cst_17 = arith.constant 1.000000e+00 : f32
    %24 = vector.broadcast %cst_17 : f32 to vector<1x128xf32>
    %25 = arith.addf %24, %23 : vector<1x128xf32>
    %26 = arith.divf %24, %25 : vector<1x128xf32>
    %c0_18 = arith.constant 0 : index
    %c0_19 = arith.constant 0 : index
    %27 = vector.load %arg8[%c0_18, %c0_19] : memref<1x128xf32, #tpu.memory_space<vmem>>, vector<1x128xf32>
    tpu.vector_store %arg8[%c0_18, %c0_19], %26 {strides = array<i32>} : memref<1x128xf32, #tpu.memory_space<vmem>>, vector<1x128xf32>,
    return
  }
  func.func @transform_0(%arg0: i32) -> (i32, i32) {
    %c0_i32 = arith.constant 0 : i32
    %c0_i32_0 = arith.constant 0 : i32
    return %arg0, %c0_i32 : i32, i32
  }
  func.func @transform_1(%arg0: i32) -> (i32, i32) {
    %c0_i32 = arith.constant 0 : i32
    %c0_i32_0 = arith.constant 0 : i32
    %c0_i32_1 = arith.constant 0 : i32
    return %c0_i32, %c0_i32_0 : i32, i32
  }
  func.func @transform_2(%arg0: i32) -> (i32, i32) {
    %c0_i32 = arith.constant 0 : i32
    %c0_i32_0 = arith.constant 0 : i32
    %c0_i32_1 = arith.constant 0 : i32
    return %c0_i32, %c0_i32_0 : i32, i32
  }
  func.func @transform_3(%arg0: i32) -> (i32, i32) {
    %c0_i32 = arith.constant 0 : i32
    %c0_i32_0 = arith.constant 0 : i32
    %c0_i32_1 = arith.constant 0 : i32
    return %c0_i32, %c0_i32_0 : i32, i32
  }
  func.func @transform_4(%arg0: i32) -> (i32, i32) {
    %c0_i32 = arith.constant 0 : i32
    %c0_i32_0 = arith.constant 0 : i32
    %c0_i32_1 = arith.constant 0 : i32
    return %c0_i32, %c0_i32_0 : i32, i32
  }
  func.func @transform_5(%arg0: i32) -> (i32, i32) {
    %c0_i32 = arith.constant 0 : i32
    %c0_i32_0 = arith.constant 0 : i32
    %c0_i32_1 = arith.constant 0 : i32
    return %c0_i32, %c0_i32_0 : i32, i32
  }
  func.func @transform_6(%arg0: i32) -> (i32, i32) {
    %c0_i32 = arith.constant 0 : i32
    %c0_i32_0 = arith.constant 0 : i32
    %c0_i32_1 = arith.constant 0 : i32
    return %c0_i32, %c0_i32_0 : i32, i32
  }
  func.func @transform_7(%arg0: i32) -> (i32, i32) {
    %c0_i32 = arith.constant 0 : i32
    %c0_i32_0 = arith.constant 0 : i32
    return %c0_i32, %arg0 : i32, i32
  }
}

</mosaic_0001>

<bundles_post_ra>
// kernel: tpu_custom_call.1
= control target key start
LH: loop header
LB: loop body
LE: loop exit
PB: predicated region body
PF: predicated region fallthrough
CT: control target
= control target key end

     0   :  { %s1222_s0 = inlined_call_operand.vmem [shape: bf16[256,16], index: 0, kind: input, shape index: {}]   ;;  %s1223_s1 = inlined_call_operand.vmem [shape: bf16[64,16], index: 1, kind: input, shape index: {}]   ;;  %s1224_s2 = inlined_call_operand.vmem [shape: f32[64,1], index: 2, kind: input, shape index: {}]   ;;  %s1225_s3 = inlined_call_operand.vmem [shape: bf16[32,64], index: 3, kind: input, shape index: {}]   ;;  %s1226_s4 = inlined_call_operand.vmem [shape: f32[32,1], index: 4, kind: input, shape index: {}]   ;;  %s1227_s5 = inlined_call_operand.vmem [shape: bf16[1,32], index: 5, kind: input, shape index: {}]   ;;  %s1228_s6 = inlined_call_operand.<no memory space> [shape: f32[1,1], index: 6, kind: input, shape index: {}]   ;;  %s1229_s7 = inlined_call_operand.hbm [shape: f32[1,256], index: 7, kind: output, shape index: {}]  }
   0x1   :  { %v12_v0 = vstv %s1228_s6 }
   0x2   :  { %13 = vst [vmem:[#allocation2] sm:$0x1] %v12_v0 }
   0x3   :  { %14 = vsyncpa [#allocation4], 0 }
   0x4   :  { %16 = vsyncpa [#allocation4 + $0x1], 0  ;;  %s1034_s26 = smov 0   ;;  %s1036_s27 = smov 0  }
   0x5   :  { %s1038_s28 = smov 0   ;;  %s1040_s29 = smov 0  }
   0x6 LB: > { %s756_s6 = sadd.s32 4294967295, %s985_s29   ;;  %s757_s30 = sadd.s32 4294967294, %s985_s29   ;;  %s985_s29 = sphi %s1040_s29, %s1235_s29   ;;  %s981_s28 = sphi %s1038_s28, %s1234_s28   ;;  %s977_s27 = sphi %s1036_s27, %s1233_s27   ;;  %s973_s26 = sphi %s1034_s26, %s1232_s26  }
   0x7   : > { %s1057_s8 = sadd.s32 1, %s985_s29   ;;  %s181_s9 = sadd.s32 1, %s981_s28 }
   0x8   : > { %s178_s10 = ssub.s32 %s985_s29, %s1057_s8  ;;  %p191_p0 = scmp.ne.s32.totalorder %s981_s28, %s977_s27 }
   0x9   : > { %p179_p1 = scmp.eq.s32.totalorder %s178_s10, 0  ;;  %p192_p2 = scmp.eq.s32.totalorder %s756_s6, 1 }
   0xa   : > { %p197_p3 = scmp.ne.s32.totalorder %s977_s27, %s973_s26  ;;  %p198_p4 = scmp.eq.s32.totalorder %s757_s30, 1 }
   0xb   : > { %s1067_s11 = scalar_select %p179_p1, %s981_s28, %s181_s9  }
   0xc   : > { %p1069_p5 = por %p192_p2, %p191_p0  ;;  %p1073_p6 = por %p198_p4, %p197_p3 }
   0xd   : > { %p760_p7 = scmp.ge.s32.totalorder %s985_s29, 1  ;;  %p243_p8 = scmp.lt.s32.totalorder %s985_s29, 3 }
   0xf   : > { %p244_p9 = pnand %p760_p7, %p243_p8 }
  0x10   : > { %s1079_s14 = sshll.u32 (!%p244_p9), %s756_s6, 4  ;;  %v913_v1 = vld [vmem:[%s1223_s1] sm:$0xff] (!%p244_p9)   ;;  %vm413_vm0 = vcmask (!%p244_p9), 130048   ;;  %v987_v2 = vmov (!%p244_p9), 0   ;;  %v307_v4 = vld [vmem:[%s1224_s2 + $0x10] sm:$0xff] (!%p244_p9)  ;;  %v306_v5 = vld [vmem:[%s1224_s2 + $0x8] sm:$0xff] (!%p244_p9) }
  0x11   : > { %247 = sbr.rel (%p244_p9) target bundleno = 812 (0x32c), region = 48  ;;  %p275_p10 = scmp.lt.s32.totalorder (!%p244_p9), %s1079_s14, 31  ;;  %825 = vmatprep.mubr.msk.bf16.mxu0 (!%p244_p9), %vm413_vm0, %v913_v1  ;;  %903 = vset.pattern.permute.xlu0 (!%p244_p9), %v987_v2  ;;  %v305_v3 = vld [vmem:[%s1224_s2] sm:$0xff] (!%p244_p9)  ;;  %v308_v6 = vld [vmem:[%s1224_s2 + $0x18] sm:$0xff] (!%p244_p9)  ;;  %v310_v11 = vld [vmem:[%s1224_s2 + $0x28] sm:$0xff] (!%p244_p9)  ;;  %vm565_vm1 = vcmask (!%p244_p9), 523264  }
  0x12   : > { %904 = vset.pattern.permute.xlu1 (!%p244_p9), %v987_v2  ;;  %315 = vperm.xlu0 (!%p244_p9), %903, %v305_v3   ;;  %v309_v10 = vld [vmem:[%s1224_s2 + $0x20] sm:$0xff] (!%p244_p9)  ;;  %v311_v12 = vld [vmem:[%s1224_s2 + $0x30] sm:$0xff] (!%p244_p9)  ;;  %v312_v15 = vld [vmem:[%s1224_s2 + $0x38] sm:$0xff] (!%p244_p9)  ;;  %vm989_vm2 = vmmov (!%p244_p9), 0   ;;  %vm638_vm3 = vcmask (!%p244_p9), 261120   ;;  %s272_s10 = sand.u32 (!%p244_p9), 1, %s977_s27   ;;  %s1180_s19 = scalar_lea.hbm (!%p244_p9), %s1229_s7, %s1079_s14 }
  0x13   : > { %325 = vperm.xlu1 (!%p244_p9), %904, %v307_v4   ;;  %v531_v16 = vld [vmem:[%s1226_s4] sm:$0xff] (!%p244_p9)  ;;  %v532_v17 = vld [vmem:[%s1226_s4 + $0x8] sm:$0xff] (!%p244_p9)  ;;  %v533_v18 = vld [vmem:[%s1226_s4 + $0x10] sm:$0xff] (!%p244_p9)  ;;  %s273_s15 = scalar_lea.vmem (!%p244_p9), [#allocation3], %s272_s10 }
  0x14   : > { %v534_v21 = vld [vmem:[%s1226_s4 + $0x18] sm:$0xff] (!%p244_p9)  ;;  %v628_v22 = vld [vmem:[#allocation2] sm:$0x1] (!%p244_p9)  ;;  %v914_v32 = vld [vmem:[%s1223_s1 + $0x8] sm:$0xff] (!%p244_p9)   ;;  %s702_s16 = sshll.u32 (!%p244_p9), %s273_s15, 4  ;;  %s1182_s16 = int_to_ptr.vmem [resolvable:$true] %s702_s16 }
  0x15   : > { %v915_v33 = vld [vmem:[%s1223_s1 + $0x10] sm:$0xff] (!%p244_p9)   ;;  %v916_v34 = vld [vmem:[%s1223_s1 + $0x18] sm:$0xff] (!%p244_p9)   ;;  %v917_v35 = vld [vmem:[%s1225_s3] sm:$0xff] (!%p244_p9)   ;;  %s923_s21 = scalar_lea.vmem (!%p244_p9), %s1182_s16, 16 }
  0x16   : > { %320 = vperm.xlu0 (!%p244_p9), %903, %v306_v5   ;;  %841 = vmatprep.mubr.msk.bf16.mxu1 (!%p244_p9), %vm565_vm1, %v917_v35  ;;  %p924_p11 = scmp.ne.s32.totalorder (!%p244_p9), %s1182_s16, %s923_s21 }
  0x17   : > { %330 = vperm.xlu1 (!%p244_p9), %904, %v308_v6  }
  0x18   : > { %s276_s17 = scalar_select %p275_p10, %s1079_s14, 31 }
  0x19   : > { %p925_p12 = pnand %p924_p11, %p1069_p5 }
  0x1a   : > { %s762_s20 = sshll.u32 %s276_s17, 2  ;;  %335 = vperm.xlu0 %903, %v309_v10  }
  0x1b   : > { %s1096_s25 = scalar_lea.vmem %s1222_s0, %s762_s20  ;;  %340 = vperm.xlu1 %904, %v310_v11   ;;  %s690_s20 = scalar_lea.sflag [#allocation4], %s272_s10 }
  0x1c   : > { %v905_v7 = vld [vmem:[%s1096_s25] sm:$0xff]   ;;  %v906_v8 = vld [vmem:[%s1096_s25 + $0x8] sm:$0xff]   ;;  %v907_v14 = vld [vmem:[%s1096_s25 + $0x10] sm:$0xff]   ;;  %p926_p13 = pneg %p925_p12 }
  0x1d   : > { %853 = vmatprep.subr.msk.bf16.mxu0 %vm413_vm0, %v905_v7  ;;  %v427_v9 = vsel %vm413_vm0, %v905_v7, 0  ;;  %v430_v13 = vsel %vm413_vm0, %v906_v8, 0  ;;  %v433_v19 = vsel %vm413_vm0, %v907_v14, 0  ;;  %v908_v20 = vld [vmem:[%s1096_s25 + $0x18] sm:$0xff]   ;;  %v909_v24 = vld [vmem:[%s1096_s25 + $0x20] sm:$0xff]   ;;  %v910_v26 = vld [vmem:[%s1096_s25 + $0x28] sm:$0xff]  }
  0x1e   : > { %810 = vmatpush3.bf16.xpose.msra.mxu0 %v427_v9  ;;  %345 = vperm.xlu0 %903, %v311_v12   ;;  %v436_v23 = vsel %vm413_vm0, %v908_v20, 0  ;;  %v439_v25 = vsel %vm413_vm0, %v909_v24, 0  ;;  %v442_v27 = vsel %vm413_vm0, %v910_v26, 0  ;;  %v911_v28 = vld [vmem:[%s1096_s25 + $0x30] sm:$0xff]   ;;  %v912_v30 = vld [vmem:[%s1096_s25 + $0x38] sm:$0xff]   ;;  %v988_v9 = vmov 0.0  }
  0x1f   : > { %854 = vmatprep.subr.msk.bf16.mxu0 %vm413_vm0, %v906_v8  ;;  %350 = vperm.xlu1 %904, %v312_v15   ;;  %v445_v29 = vsel %vm413_vm0, %v911_v28, 0  ;;  %v448_v31 = vsel %vm413_vm0, %v912_v30, 0  ;;  %v918_v8 = vld [vmem:[%s1225_s3 + $0x8] sm:$0xff]   ;;  %s990_s25 = smov [#allocation3]  }
  0x20   : > { %s927_s22 = sshll.u32 %s990_s25, 4  ;;  %s928_s22 = int_to_ptr.vmem [resolvable:$false] %s927_s22 }
  0x21   : > { %s929_s23 = scalar_lea.vmem %s928_s22, 32  ;;  %p930_p0 = scmp.lt.s32.totalorder %s1182_s16, %s928_s22 }
  0x22   : > { %537 = vperm.xlu0 %903, %v531_v16   ;;  %p931_p1 = scmp.lt.s32.totalorder %s929_s23, %s923_s21 }
  0x23   : > { %542 = vperm.xlu1 %904, %v532_v17  }
  0x24   : > { %p932_p2 = por %p931_p1, %p930_p0 }
  0x26   : > { %812 = vmatpush3.bf16.xpose.msra.mxu0 %v430_v13  ;;  %547 = vperm.xlu0 %903, %v533_v18   ;;  %p933_p3 = pnand %p932_p2, %p926_p13 }
  0x27   : > { %855 = vmatprep.subr.msk.bf16.mxu0 %vm413_vm0, %v907_v14  ;;  %552 = vperm.xlu1 %904, %v534_v21  }
  0x2a   : > { %631 = vperm.xlu0 %903, %v628_v22  }
  0x2e   : > { %814 = vmatpush3.bf16.xpose.msra.mxu0 %v433_v19 }
  0x2f   : > { %856 = vmatprep.subr.msk.bf16.mxu0 %vm413_vm0, %v908_v20 }
  0x36   : > { %816 = vmatpush3.bf16.xpose.msra.mxu0 %v436_v23 }
  0x37   : > { %857 = vmatprep.subr.msk.bf16.mxu0 %vm413_vm0, %v909_v24 }
  0x3e   : > { %818 = vmatpush3.bf16.xpose.msra.mxu0 %v439_v25 }
  0x3f   : > { %858 = vmatprep.subr.msk.bf16.mxu0 %vm413_vm0, %v910_v26 }
  0x46   : > { %820 = vmatpush3.bf16.xpose.msra.mxu0 %v442_v27 }
  0x47   : > { %859 = vmatprep.subr.msk.bf16.mxu0 %vm413_vm0, %v911_v28  ;;  %v625_v28 = vld [vmem:[%s1227_s5] sm:$0x1] }
  0x4e   : > { %822 = vmatpush3.bf16.xpose.msra.mxu0 %v445_v29  ;;  %v634_v29 = vlaneseq }
  0x4f   : > { %860 = vmatprep.subr.msk.bf16.mxu0 %vm413_vm0, %v912_v30 }
  0x50   : > { %v635_v30 = vshrl.u32 %v634_v29, 7 }
  0x56   : > { %824 = vmatpush3.bf16.xpose.msra.mxu0 %v448_v31  ;;  %v636_v31 = vsub.s32 0, %v635_v30 }
  0x5d   : > { %826 = vmatmul.mubr.msk.bf16.vlgmr.msra.gmra.mrb[0].mxu0 %vm413_vm0, %v914_v32 }
  0x5e   : > { %829 = vmatprep.mubr.msk.bf16.mxu0 %vm413_vm0, %v915_v33 }
  0x65   : > { %830 = vmatmul.mubr.msk.bf16.gmra.mrb[4].mxu0 %vm413_vm0, %v916_v34 }
  0x91   : > { %v316_v36 = vpop.permute.xlu0 %315 }
  0x92   : > { %v326_v37 = vpop.permute.xlu1 %325 }
  0x95   : > { %v321_v38 = vpop.permute.xlu0 %320 }
  0x96   : > { %v331_v39 = vpop.permute.xlu1 %330 }
  0x99   : > { %v336_v43 = vpop.permute.xlu0 %335 }
  0x9a   : > { %v341_v48 = vpop.permute.xlu1 %340 }
  0x9d   : > { %v346_v55 = vpop.permute.xlu0 %345 }
  0x9e   : > { %v351_v60 = vpop.permute.xlu1 %350 }
  0xa1   : > { %v538_v10 = vpop.permute.xlu0 %537 }
  0xa2   : > { %v543_v11 = vpop.permute.xlu1 %542 }
  0xa5   : > { %v548_v12 = vpop.permute.xlu0 %547 }
  0xa6   : > { %v553_v16 = vpop.permute.xlu1 %552 }
  0xa9   : > { %v632_v32 = vpop.permute.xlu0 %631 }
  0xaa   : > { %v637_v33 = vrot.slane %v632_v32, %v636_v31 }
 0x130   : > { %v827_v40 = vpop.f32.mrb[0].mxu0 }
 0x131   : > { %v493_v41 = vadd.f32 %v827_v40, %v326_v37  ;;  %v484_v42 = vpop.f32.mrb[1].mxu0 }
 0x132   : > { %v485_v44 = vadd.f32 %v484_v42, %v316_v36  ;;  %v828_v45 = vpop.f32.mrb[2].mxu0 }
 0x133   : > { %v496_v46 = vadd.f32 %v828_v45, %v331_v39  ;;  %v487_v47 = vpop.f32.mrb[3].mxu0  ;;  %v517_v50 = vmax.f32 %v493_v41, 0.0 }
 0x134   : > { %v488_v49 = vadd.f32 %v487_v47, %v321_v38  ;;  %v515_v52 = vmax.f32 %v485_v44, 0.0 }
 0x135   : > { %v518_v51 = vmax.f32 %v496_v46, 0.0 }
 0x136   : > { %v516_v53 = vmax.f32 %v488_v49, 0.0 }
 0x137   : > { %v528_v54 = vpack.c.bf16 %v518_v51, %v517_v50 }
 0x138   : > { %v831_v56 = vpop.f32.mrb[4].mxu0  ;;  %v527_v57 = vpack.c.bf16 %v516_v53, %v515_v52 }
 0x139   : > { %v509_v58 = vadd.f32 %v831_v56, %v346_v55  ;;  %v500_v59 = vpop.f32.mrb[5].mxu0 }
 0x13a   : > { %v501_v61 = vadd.f32 %v500_v59, %v336_v43  ;;  %v832_v62 = vpop.f32.mrb[6].mxu0  ;;  %833 = vmatprep.subr.bf16.mxu1 %v527_v57 }
 0x13b   : > { %v512_v63 = vadd.f32 %v832_v62, %v351_v60  ;;  %v503_v0 = vpop.f32.mrb[7].mxu0  ;;  %834 = vmatpush3.bf16.msra.mxu1 %v527_v57  ;;  %v521_v2 = vmax.f32 %v509_v58, 0.0 }
 0x13c   : > { %v504_v1 = vadd.f32 %v503_v0, %v341_v48  ;;  %835 = vmatprep.subr.bf16.mxu1 %v528_v54  ;;  %v519_v4 = vmax.f32 %v501_v61, 0.0 }
 0x13d   : > { %v522_v3 = vmax.f32 %v512_v63, 0.0 }
 0x13e   : > { %v520_v5 = vmax.f32 %v504_v1, 0.0 }
 0x13f   : > { %v530_v6 = vpack.c.bf16 %v522_v3, %v521_v2  ;;  %836 = vmatpush3.bf16.msra.mxu1 %v528_v54 }
 0x140   : > { %v529_v7 = vpack.c.bf16 %v520_v5, %v519_v4 }
 0x142   : > { %837 = vmatprep.subr.bf16.mxu1 %v529_v7 }
 0x143   : > { %838 = vmatpush3.bf16.msra.mxu1 %v529_v7 }
 0x144   : > { %839 = vmatprep.subr.bf16.mxu1 %v530_v6 }
 0x147   : > { %840 = vmatpush3.bf16.msra.mxu1 %v530_v6 }
 0x148   : > { %845 = vmatprep.subr.bf16.mxu1 %v988_v9 }
 0x14a   : > { %842 = vmatmul.mubr.msk.bf16.vlgmr.msra.gmra.mrb[0].mxu1 %vm565_vm1, %v918_v8 }
 0x14b   : > { %849 = vmatprep.mubr.msk.bf16.mxu1 %vm989_vm2, %v988_v9 }
 0x21d   : > { %v843_v13 = vpop.f32.mrb[0].mxu1 }
 0x21e   : > { %v615_v14 = vadd.f32 %v843_v13, %v548_v12  ;;  %v606_v15 = vpop.f32.mrb[1].mxu1 }
 0x21f   : > { %v607_v17 = vadd.f32 %v606_v15, %v538_v10  ;;  %v844_v18 = vpop.f32.mrb[2].mxu1 }
 0x220   : > { %v618_v19 = vadd.f32 %v844_v18, %v553_v16  ;;  %v609_v20 = vpop.f32.mrb[3].mxu1  ;;  %v623_v22 = vmax.f32 %v615_v14, 0.0 }
 0x221   : > { %v610_v21 = vadd.f32 %v609_v20, %v543_v11  ;;  %v621_v24 = vmax.f32 %v607_v17, 0.0 }
 0x222   : > { %v624_v23 = vmax.f32 %v618_v19, 0.0 }
 0x223   : > { %v622_v25 = vmax.f32 %v610_v21, 0.0 }
 0x224   : > { %v627_v26 = vpack.c.bf16 %v624_v23, %v623_v22 }
 0x225   : > { %v626_v27 = vpack.c.bf16 %v622_v25, %v621_v24 }
 0x227   : > { %846 = vmatpush3.bf16.msra.mxu1 %v626_v27 }
 0x228   : > { %847 = vmatprep.subr.bf16.mxu1 %v988_v9 }
 0x22b   : > { %848 = vmatpush3.bf16.msra.mxu1 %v627_v26 }
 0x22e   : > { %850 = vmatmul.mubr.msk.bf16.vlgmr.msra.gmra.mrb[4].mxu1 %vm638_vm3, %v625_v28 }
 0x301   : > { %v676_v34 = vpop.f32.mrb[4].mxu1 }
 0x302   : > { %v677_v35 = vadd.f32 %v676_v34, %v637_v33  ;;  %v851_v36 = vpop.f32.mrb[5].mxu1 }
 0x303   : > { %v679_v37 = vpop.f32.mrb[6].mxu1 }
 0x304   : > { %v784_v38 = vmul.f32 -1.442695, %v677_v35  ;;  %v852_v39 = vpop.f32.mrb[7].mxu1 }
 0x306   : > { %919 = vpow2.f32 %v784_v38 }
 0x310   : > { %v920_v40 = vpop.eup %919 }
 0x311   : > { %v685_v41 = vadd.f32 1.0, %v920_v40 }
 0x313   : > { %921 = vrcp.f32 %v685_v41 }
 0x31d   : > { %v922_v42 = vpop.eup %921 }
 0x31e   : > { %688 = vst [vmem:[%s273_s15] sm:$0x1] %v922_v42 }
 0x31f   : > { %936 = shalt.err (!%p933_p3)
}
 0x320   : > { %s937_s14 = scalar_lea.hbm %s1180_s19, 16  ;;  %s941_s30 = scalar_lea.hbm %s1229_s7, 32 }
 0x321   : > { %p938_p4 = scmp.ne.s32.totalorder %s1180_s19, %s937_s14  ;;  %p942_p9 = scmp.lt.u32.totalorder %s1180_s19, %s1229_s7 }
 0x322   : > { %p943_p10 = scmp.lt.u32.totalorder %s941_s30, %s937_s14  ;;  %p945_p12 = scmp.lt.u32.totalorder %s937_s14, %s1180_s19 }
 0x323   : > { %p939_p7 = pnand %p938_p4, %p1069_p5 }
 0x324   : > { %p944_p11 = por %p943_p10, %p942_p9 }
 0x325   : > { %p940_p8 = pneg %p939_p7 }
 0x326   : > { %p946_p13 = por %p945_p12, %p944_p11 }
 0x328   : > { %p947_p0 = pnand %p946_p13, %p940_p8 }
 0x32a   : > { %950 = shalt.err (!%p947_p0)
}
 0x32b   : > { %861 = dma.vmem_to_hbm [thread:$0]  (%p1069_p5), %s1182_s16, 16, %s1180_s19, %s690_s20  }
 0x32c PF: > { %p867_p1 = scmp.ge.s32.totalorder %s985_s29, 2  ;;  %s714_s15 = sand.u32 1, %s973_s26  }
 0x32d   : > { %s715_s17 = scalar_lea.sflag [#allocation4], %s714_s15 }
 0x32e   : > { %p864_p2 = pnand %p867_p1, %p1073_p6 }
 0x330   : > { %968 = dma.done.wait (!%p864_p2), %s715_s17, 16  }
 0x331   : > { %970 = vsyncadd (!%p864_p2), %s715_s17, 4294967280  ;;  %p19_p3 = scmp.ge.s32.totalorder %s1057_s8, 4   ;;  %s1232_s26 = smov %s977_s27 }
 0x332   : > { %s1233_s27 = smov %s981_s28  ;;  %s1234_s28 = smov %s1067_s11 }
 0x333   : > { %s1235_s29 = smov %s1057_s8  ;;  %21 = sbr.rel (!%p19_p3) target bundleno = 6 (0x6), region = 83 }
 0x33a   :  { %719 = vsyncpa [#allocation4], 1 }
 0x33b   :  { %721 = vsyncpa [#allocation4 + $0x1], 1 }

</bundles_post_ra>
